<compile_context>
chip_gen: v6e
topology: v6e:2x2x1
jax: 0.10.0
libtpu: 0.0.40
codegen_flags: <defaults>
</compile_context>

<pallas_src>
import functools

import jax
import jax.numpy as jnp
from jax import lax
from jax.experimental import pallas as pl
from jax.experimental.pallas import tpu as pltpu


def _round_up(x, m):
    return ((x + m - 1) // m) * m


def _linear_relu(x_bf16, w_ref, b_ref):
    # y = relu(x @ W + b); W is pre-transposed to (in, out) and bf16; accumulate f32.
    y = lax.dot_general(
        x_bf16,
        w_ref[...],
        (((1,), (0,)), ((), ())),
        preferred_element_type=jnp.float32,
    )
    return jnp.maximum(y + b_ref[...], 0.0)


def ae_masked_kernel(
    x_ref,            # (TB, D)   input batch tile
    w1_ref, b1_ref,   # (D, H)  bf16, (1, H)  f32   encoder_hidden_layer
    w2_ref, b2_ref,   # (H, BN) bf16 (mask folded), (1, BN) f32   encoder_output_layer
    w3_ref, b3_ref,   # (BN, H) bf16 (mask.T folded), (1, H) f32  decoder_hidden_layer
    w4_ref, b4_ref,   # (H, D)  bf16, (1, D)  f32   decoder_output_layer
    out_ref,          # (TB, D)
):
    x = x_ref[...].astype(jnp.bfloat16)
    h = _linear_relu(x, w1_ref, b1_ref)                       # f32 (TB, H)
    code = _linear_relu(h.astype(jnp.bfloat16), w2_ref, b2_ref)   # f32 (TB, BN)
    h2 = _linear_relu(code.astype(jnp.bfloat16), w3_ref, b3_ref)  # f32 (TB, H)
    rec = _linear_relu(h2.astype(jnp.bfloat16), w4_ref, b4_ref)   # f32 (TB, D)
    out_ref[...] = rec.astype(out_ref.dtype)


def _const_spec(shape):
    # grid-invariant block (weights/biases stay VMEM-resident, no re-DMA per step)
    return pl.BlockSpec(shape, lambda i: (0, 0))


@functools.partial(jax.jit, static_argnames=("block_b",))
def ae_masked_forward(features, params, mask, *, block_b=256):
    B, D = features.shape
    w1, b1, w2, b2, w3, b3, w4, b4 = params
    H = w1.shape[0]
    BN = w2.shape[0]

    # ---- one-time wrapper-side prep (outside the kernel hot path) ----
    w1t = w1.T.astype(jnp.bfloat16)               # (D, H)
    w2t = (w2 * mask).T.astype(jnp.bfloat16)      # (H, BN)  mask folded in
    w3t = (w3 * mask.T).T.astype(jnp.bfloat16)    # (BN, H)  mask.T folded in
    w4t = w4.T.astype(jnp.bfloat16)               # (H, D)
    b1r = b1.reshape(1, H).astype(jnp.float32)
    b2r = b2.reshape(1, BN).astype(jnp.float32)
    b3r = b3.reshape(1, H).astype(jnp.float32)
    b4r = b4.reshape(1, D).astype(jnp.float32)

    # batch tile: multiple of 16 sublanes (bf16 packing), capped at block_b
    tb = _round_up(min(block_b, _round_up(B, 16)), 16)
    Bp = _round_up(B, tb)
    x = features if Bp == B else jnp.pad(features, ((0, Bp - B), (0, 0)))

    out = pl.pallas_call(
        ae_masked_kernel,
        out_shape=jax.ShapeDtypeStruct((Bp, D), features.dtype),
        grid=(Bp // tb,),
        in_specs=[
            pl.BlockSpec((tb, D), lambda i: (i, 0)),   # activations: tiled over batch
            _const_spec((D, H)), _const_spec((1, H)),
            _const_spec((H, BN)), _const_spec((1, BN)),
            _const_spec((BN, H)), _const_spec((1, H)),
            _const_spec((H, D)), _const_spec((1, D)),
        ],
        out_specs=pl.BlockSpec((tb, D), lambda i: (i, 0)),
        compiler_params=pltpu.CompilerParams(
            dimension_semantics=("parallel",),   # batch axis -> both v7x TCs
        ),
    )(x, w1t, b1r, w2t, b2r, w3t, b3r, w4t, b4r)

    return out[:B] if Bp != B else out


def build_mask(bottleneck_sizes, hidden_size):
    total_bn = sum(bottleneck_sizes)
    mask = jnp.zeros((total_bn, hidden_size), dtype=jnp.float32)
    block_start_in = 0
    block_start_out = 0
    for bs in bottleneck_sizes:
        bs_in = int(bs / total_bn * hidden_size)
        mask = mask.at[
            block_start_out : block_start_out + bs,
            block_start_in : block_start_in + bs_in,
        ].set(1.0)
        block_start_in += bs_in
        block_start_out += bs
    return mask


def init_linear(key, out_f, in_f):
    # deterministic init mimicking nn.Linear's U(-1/sqrt(in), 1/sqrt(in))
    kw, kb = jax.random.split(key)
    bound = 1.0 / jnp.sqrt(in_f)
    w = jax.random.uniform(kw, (out_f, in_f), jnp.float32, -bound, bound)
    b = jax.random.uniform(kb, (out_f,), jnp.float32, -bound, bound)
    return w, b


def reference_forward(features, params, mask):
    # faithful f32 replica of AEmasked.forward (PyTorch (out,in) convention)
    w1, b1, w2, b2, w3, b3, w4, b4 = params
    h = jax.nn.relu(features @ w1.T + b1)
    code = jax.nn.relu(h @ (w2 * mask).T + b2)
    h2 = jax.nn.relu(code @ (w3 * mask.T).T + b3)
    return jax.nn.relu(h2 @ w4.T + b4)


if __name__ == "__main__":
    # shapes consistent with the module: hidden_size = 128 (fixed in __init__),
    # input_shape (flattened features) = 256, bottleneck_sizes = [64, 64] -> 128
    B = 256
    INPUT_SHAPE = 256
    HIDDEN = 128
    BOTTLENECK_SIZES = [64, 64]
    TOTAL_BN = sum(BOTTLENECK_SIZES)

    key = jax.random.PRNGKey(0)
    kx, k1, k2, k3, k4 = jax.random.split(key, 5)

    features = jax.random.normal(kx, (B, INPUT_SHAPE), jnp.float32)

    w1, b1 = init_linear(k1, HIDDEN, INPUT_SHAPE)    # encoder_hidden_layer
    w2, b2 = init_linear(k2, TOTAL_BN, HIDDEN)       # encoder_output_layer
    w3, b3 = init_linear(k3, HIDDEN, TOTAL_BN)       # decoder_hidden_layer
    w4, b4 = init_linear(k4, INPUT_SHAPE, HIDDEN)    # decoder_output_layer
    params = (w1, b1, w2, b2, w3, b3, w4, b4)

    mask = build_mask(BOTTLENECK_SIZES, HIDDEN)

    out = ae_masked_forward(features, params, mask, block_b=128)  # grid=(2,)
    out = jax.block_until_ready(out)

    ref = reference_forward(features, params, mask)
    assert out.shape == (B, INPUT_SHAPE)
    # bf16 weights/MXU feed with f32 accumulation -> slightly looser tolerance vs f32 ref
    assert jnp.allclose(out, ref, atol=2e-2, rtol=2e-2), float(
        jnp.max(jnp.abs(out - ref))
    )

    print("KERNEL_OK")
</pallas_src>

<mosaic_0001>
module attributes {stable_mosaic.version = 11 : i64} {
  func.func @ae_masked_kernel(%arg0: i32, %arg1: memref<128x256xf32, #tpu.memory_space<vmem>>, %arg2: memref<256x128xbf16, #tpu.memory_space<vmem>>, %arg3: memref<1x128xf32, #tpu.memory_space<vmem>>, %arg4: memref<128x128xbf16, #tpu.memory_space<vmem>>, %arg5: memref<1x128xf32, #tpu.memory_space<vmem>>, %arg6: memref<128x128xbf16, #tpu.memory_space<vmem>>, %arg7: memref<1x128xf32, #tpu.memory_space<vmem>>, %arg8: memref<128x256xbf16, #tpu.memory_space<vmem>>, %arg9: memref<1x256xf32, #tpu.memory_space<vmem>>, %arg10: memref<128x256xf32, #tpu.memory_space<vmem>>) attributes {dimension_semantics = [#tpu.dimension_semantics<parallel>], iteration_bounds = array<i64: 2>, scalar_prefetch = 0 : i64, scratch_operands = 0 : i64, tpu.core_type = #tpu.core_type<tc>, window_params = [{transform_indices = @transform_0, window_bounds = array<i64: 128, 256>}, {pipeline_mode = #tpu.pipeline_mode<synchronous>, transform_indices = @transform_1, window_bounds = array<i64: 256, 128>}, {pipeline_mode = #tpu.pipeline_mode<synchronous>, transform_indices = @transform_2, window_bounds = array<i64: 1, 128>}, {pipeline_mode = #tpu.pipeline_mode<synchronous>, transform_indices = @transform_3, window_bounds = array<i64: 128, 128>}, {pipeline_mode = #tpu.pipeline_mode<synchronous>, transform_indices = @transform_4, window_bounds = array<i64: 1, 128>}, {pipeline_mode = #tpu.pipeline_mode<synchronous>, transform_indices = @transform_5, window_bounds = array<i64: 128, 128>}, {pipeline_mode = #tpu.pipeline_mode<synchronous>, transform_indices = @transform_6, window_bounds = array<i64: 1, 128>}, {pipeline_mode = #tpu.pipeline_mode<synchronous>, transform_indices = @transform_7, window_bounds = array<i64: 128, 256>}, {pipeline_mode = #tpu.pipeline_mode<synchronous>, transform_indices = @transform_8, window_bounds = array<i64: 1, 256>}, {transform_indices = @transform_9, window_bounds = array<i64: 128, 256>}]} {
    %c0 = arith.constant 0 : index
    %c0_0 = arith.constant 0 : index
    %0 = vector.load %arg1[%c0, %c0_0] : memref<128x256xf32, #tpu.memory_space<vmem>>, vector<128x256xf32>
    %1 = arith.truncf %0 : vector<128x256xf32> to vector<128x256xbf16>
    %c0_1 = arith.constant 0 : index
    %c0_2 = arith.constant 0 : index
    %2 = vector.load %arg2[%c0_1, %c0_2] : memref<256x128xbf16, #tpu.memory_space<vmem>>, vector<256x128xbf16>
    %cst = arith.constant dense<0.000000e+00> : vector<128x128xf32>
    %3 = tpu.matmul %1, %2, %cst {dimension_numbers = #tpu.dot_dimension_numbers<[1], [0], [0], [1], [0, 0, 1, 1], [], []>} : vector<128x256xbf16>, vector<256x128xbf16>, vector<128x128xf32> -> vector<128x128xf32>
    %c0_3 = arith.constant 0 : index
    %c0_4 = arith.constant 0 : index
    %4 = vector.load %arg3[%c0_3, %c0_4] : memref<1x128xf32, #tpu.memory_space<vmem>>, vector<1x128xf32>
    %5 = vector.broadcast %4 : vector<1x128xf32> to vector<128x128xf32>
    %6 = arith.addf %3, %5 : vector<128x128xf32>
    %cst_5 = arith.constant 0.000000e+00 : f32
    %7 = vector.broadcast %cst_5 : f32 to vector<128x128xf32>
    %8 = arith.maximumf %6, %7 : vector<128x128xf32>
    %9 = arith.truncf %8 : vector<128x128xf32> to vector<128x128xbf16>
    %c0_6 = arith.constant 0 : index
    %c0_7 = arith.constant 0 : index
    %10 = vector.load %arg4[%c0_6, %c0_7] : memref<128x128xbf16, #tpu.memory_space<vmem>>, vector<128x128xbf16>
    %cst_8 = arith.constant dense<0.000000e+00> : vector<128x128xf32>
    %11 = tpu.matmul %9, %10, %cst_8 {dimension_numbers = #tpu.dot_dimension_numbers<[1], [0], [0], [1], [0, 0, 1, 1], [], []>} : vector<128x128xbf16>, vector<128x128xbf16>, vector<128x128xf32> -> vector<128x128xf32>
    %c0_9 = arith.constant 0 : index
    %c0_10 = arith.constant 0 : index
    %12 = vector.load %arg5[%c0_9, %c0_10] : memref<1x128xf32, #tpu.memory_space<vmem>>, vector<1x128xf32>
    %13 = vector.broadcast %12 : vector<1x128xf32> to vector<128x128xf32>
    %14 = arith.addf %11, %13 : vector<128x128xf32>
    %cst_11 = arith.constant 0.000000e+00 : f32
    %15 = vector.broadcast %cst_11 : f32 to vector<128x128xf32>
    %16 = arith.maximumf %14, %15 : vector<128x128xf32>
    %17 = arith.truncf %16 : vector<128x128xf32> to vector<128x128xbf16>
    %c0_12 = arith.constant 0 : index
    %c0_13 = arith.constant 0 : index
    %18 = vector.load %arg6[%c0_12, %c0_13] : memref<128x128xbf16, #tpu.memory_space<vmem>>, vector<128x128xbf16>
    %cst_14 = arith.constant dense<0.000000e+00> : vector<128x128xf32>
    %19 = tpu.matmul %17, %18, %cst_14 {dimension_numbers = #tpu.dot_dimension_numbers<[1], [0], [0], [1], [0, 0, 1, 1], [], []>} : vector<128x128xbf16>, vector<128x128xbf16>, vector<128x128xf32> -> vector<128x128xf32>
    %c0_15 = arith.constant 0 : index
    %c0_16 = arith.constant 0 : index
    %20 = vector.load %arg7[%c0_15, %c0_16] : memref<1x128xf32, #tpu.memory_space<vmem>>, vector<1x128xf32>
    %21 = vector.broadcast %20 : vector<1x128xf32> to vector<128x128xf32>
    %22 = arith.addf %19, %21 : vector<128x128xf32>
    %cst_17 = arith.constant 0.000000e+00 : f32
    %23 = vector.broadcast %cst_17 : f32 to vector<128x128xf32>
    %24 = arith.maximumf %22, %23 : vector<128x128xf32>
    %25 = arith.truncf %24 : vector<128x128xf32> to vector<128x128xbf16>
    %c0_18 = arith.constant 0 : index
    %c0_19 = arith.constant 0 : index
    %26 = vector.load %arg8[%c0_18, %c0_19] : memref<128x256xbf16, #tpu.memory_space<vmem>>, vector<128x256xbf16>
    %cst_20 = arith.constant dense<0.000000e+00> : vector<128x256xf32>
    %27 = tpu.matmul %25, %26, %cst_20 {dimension_numbers = #tpu.dot_dimension_numbers<[1], [0], [0], [1], [0, 0, 1, 1], [], []>} : vector<128x128xbf16>, vector<128x256xbf16>, vector<128x256xf32> -> vector<128x256xf32>
    %c0_21 = arith.constant 0 : index
    %c0_22 = arith.constant 0 : index
    %28 = vector.load %arg9[%c0_21, %c0_22] : memref<1x256xf32, #tpu.memory_space<vmem>>, vector<1x256xf32>
    %29 = vector.broadcast %28 : vector<1x256xf32> to vector<128x256xf32>
    %30 = arith.addf %27, %29 : vector<128x256xf32>
    %cst_23 = arith.constant 0.000000e+00 : f32
    %31 = vector.broadcast %cst_23 : f32 to vector<128x256xf32>
    %32 = arith.maximumf %30, %31 : vector<128x256xf32>
    %c0_24 = arith.constant 0 : index
    %c0_25 = arith.constant 0 : index
    %33 = vector.load %arg10[%c0_24, %c0_25] : memref<128x256xf32, #tpu.memory_space<vmem>>, vector<128x256xf32>
    tpu.vector_store %arg10[%c0_24, %c0_25], %32 {strides = array<i32>} : memref<128x256xf32, #tpu.memory_space<vmem>>, vector<128x256xf32>,
    return
  }
  func.func @transform_0(%arg0: i32) -> (i32, i32) {
    %c0_i32 = arith.constant 0 : i32
    %c0_i32_0 = arith.constant 0 : i32
    return %arg0, %c0_i32 : i32, i32
  }
  func.func @transform_1(%arg0: i32) -> (i32, i32) {
    %c0_i32 = arith.constant 0 : i32
    %c0_i32_0 = arith.constant 0 : i32
    %c0_i32_1 = arith.constant 0 : i32
    return %c0_i32, %c0_i32_0 : i32, i32
  }
  func.func @transform_2(%arg0: i32) -> (i32, i32) {
    %c0_i32 = arith.constant 0 : i32
    %c0_i32_0 = arith.constant 0 : i32
    %c0_i32_1 = arith.constant 0 : i32
    return %c0_i32, %c0_i32_0 : i32, i32
  }
  func.func @transform_3(%arg0: i32) -> (i32, i32) {
    %c0_i32 = arith.constant 0 : i32
    %c0_i32_0 = arith.constant 0 : i32
    %c0_i32_1 = arith.constant 0 : i32
    return %c0_i32, %c0_i32_0 : i32, i32
  }
  func.func @transform_4(%arg0: i32) -> (i32, i32) {
    %c0_i32 = arith.constant 0 : i32
    %c0_i32_0 = arith.constant 0 : i32
    %c0_i32_1 = arith.constant 0 : i32
    return %c0_i32, %c0_i32_0 : i32, i32
  }
  func.func @transform_5(%arg0: i32) -> (i32, i32) {
    %c0_i32 = arith.constant 0 : i32
    %c0_i32_0 = arith.constant 0 : i32
    %c0_i32_1 = arith.constant 0 : i32
    return %c0_i32, %c0_i32_0 : i32, i32
  }
  func.func @transform_6(%arg0: i32) -> (i32, i32) {
    %c0_i32 = arith.constant 0 : i32
    %c0_i32_0 = arith.constant 0 : i32
    %c0_i32_1 = arith.constant 0 : i32
    return %c0_i32, %c0_i32_0 : i32, i32
  }
  func.func @transform_7(%arg0: i32) -> (i32, i32) {
    %c0_i32 = arith.constant 0 : i32
    %c0_i32_0 = arith.constant 0 : i32
    %c0_i32_1 = arith.constant 0 : i32
    return %c0_i32, %c0_i32_0 : i32, i32
  }
  func.func @transform_8(%arg0: i32) -> (i32, i32) {
    %c0_i32 = arith.constant 0 : i32
    %c0_i32_0 = arith.constant 0 : i32
    %c0_i32_1 = arith.constant 0 : i32
    return %c0_i32, %c0_i32_0 : i32, i32
  }
  func.func @transform_9(%arg0: i32) -> (i32, i32) {
    %c0_i32 = arith.constant 0 : i32
    %c0_i32_0 = arith.constant 0 : i32
    return %arg0, %c0_i32 : i32, i32
  }
}

</mosaic_0001>

<bundles_post_ra>
// kernel: ae_masked_forward.1
= control target key start
LH: loop header
LB: loop body
LE: loop exit
PB: predicated region body
PF: predicated region fallthrough
CT: control target
= control target key end

     0   :  { %14 = vsyncpa [#allocation3], 0  ;;  %s2238_s0 = inlined_call_operand.vmem [shape: f32[256,256], index: 0, kind: input, shape index: {}]   ;;  %s2239_s1 = inlined_call_operand.vmem [shape: bf16[256,128], index: 1, kind: input, shape index: {}]   ;;  %s2240_s2 = inlined_call_operand.vmem [shape: f32[1,128], index: 2, kind: input, shape index: {}]   ;;  %s2241_s3 = inlined_call_operand.vmem [shape: bf16[128,128], index: 3, kind: input, shape index: {}]   ;;  %s2242_s4 = inlined_call_operand.vmem [shape: f32[1,128], index: 4, kind: input, shape index: {}]   ;;  %s2243_s5 = inlined_call_operand.vmem [shape: bf16[128,128], index: 5, kind: input, shape index: {}]   ;;  %s2244_s6 = inlined_call_operand.vmem [shape: f32[1,128], index: 6, kind: input, shape index: {}]   ;;  %s2245_s7 = inlined_call_operand.vmem [shape: bf16[128,256], index: 7, kind: input, shape index: {}]   ;;  %s2246_s8 = inlined_call_operand.vmem [shape: f32[1,256], index: 8, kind: input, shape index: {}]   ;;  %s2247_s9 = inlined_call_operand.hbm [shape: f32[256,256], index: 9, kind: output, shape index: {}]  }
   0x1   :  { %16 = vsyncpa [#allocation3 + $0x1], 0  ;;  %s1846_s30 = smov 0   ;;  %s1848_s10 = smov 0  }
   0x2   :  { %s1850_s11 = smov 0   ;;  %s1852_s12 = smov 0  }
   0x3 LB: > { %s1867_s13 = sadd.s32 4294967295, %s1790_s12   ;;  %s1388_s14 = sadd.s32 4294967294, %s1790_s12   ;;  %s1790_s12 = sphi %s1852_s12, %s2253_s12   ;;  %s1786_s11 = sphi %s1850_s11, %s2252_s11   ;;  %s1782_s10 = sphi %s1848_s10, %s2251_s10   ;;  %s1778_s30 = sphi %s1846_s30, %s2250_s30  }
   0x4   : > { %s1871_s15 = sadd.s32 1, %s1790_s12   ;;  %s223_s16 = sadd.s32 1, %s1786_s11 }
   0x5   : > { %s220_s17 = ssub.s32 %s1790_s12, %s1871_s15  ;;  %p233_p0 = scmp.ne.s32.totalorder %s1786_s11, %s1782_s10 }
   0x6   : > { %p221_p1 = scmp.eq.s32.totalorder %s220_s17, 0  ;;  %p234_p2 = scmp.eq.s32.totalorder %s1867_s13, 1 }
   0x7   : > { %p239_p3 = scmp.ne.s32.totalorder %s1782_s10, %s1778_s30  ;;  %p240_p4 = scmp.eq.s32.totalorder %s1388_s14, 1 }
   0x8   : > { %s1882_s18 = scalar_select %p221_p1, %s1786_s11, %s223_s16  }
   0x9   : > { %p1884_p5 = por %p234_p2, %p233_p0  ;;  %p1888_p6 = por %p240_p4, %p239_p3 }
   0xa   : > { %p1391_p7 = scmp.ge.s32.totalorder %s1790_s12, 1  ;;  %p292_p8 = scmp.lt.s32.totalorder %s1790_s12, 3 }
   0xc   : > { %p293_p9 = pnand %p1391_p7, %p292_p8 }
   0xd   : > { %s1393_s23 = sshll.u32 (!%p293_p9), %s1867_s13, 4  ;;  %s1455_s27 = sshll.u32 (!%p293_p9), %s1867_s13, 12 }
   0xe   : > { %296 = sbr.rel (%p293_p9) target bundleno = 951 (0x3b7), region = 56  ;;  %p330_p10 = scmp.lt.s32.totalorder (!%p293_p9), %s1393_s23, 31 }
   0xf   : > { %s2190_s16 = scalar_lea.hbm (!%p293_p9), %s2247_s9, %s1455_s27  ;;  %s1793_s21 = smov (!%p293_p9), [#allocation2]  }
  0x10   : > { %s1734_s22 = sshll.u32 (!%p293_p9), %s1793_s21, 4  ;;  %s1735_s22 = int_to_ptr.vmem [resolvable:$false] %s1734_s22 }
  0x11   : > { %s1736_s24 = scalar_lea.vmem (!%p293_p9), %s1735_s22, 8192 }
  0x13   : > { %v1674_v0 = vld [vmem:[%s2239_s1 + $0x78] sm:$0xff]   ;;  %v1676_v2 = vld [vmem:[%s2239_s1 + $0x70] sm:$0xff]   ;;  %v1678_v4 = vld [vmem:[%s2239_s1 + $0x68] sm:$0xff]   ;;  %s2255_s23 = smov (!%p330_p10, %s1393_s23), 31 }
  0x14   : > { %v1675_v1 = vld [vmem:[%s2239_s1 + $0x38] sm:$0xff]   ;;  %1456 = vmatprep.subr.bf16.mxu0 %v1674_v0  ;;  %1616 = vmatprep.subr.bf16.mxu1 %v1674_v0  ;;  %v1677_v3 = vld [vmem:[%s2239_s1 + $0x30] sm:$0xff]   ;;  %v1679_v5 = vld [vmem:[%s2239_s1 + $0x28] sm:$0xff]   ;;  %s1453_s25 = sshll.u32 %s2255_s23, 4 }
  0x15   : > { %1457 = vmatpush3.bf16.msra.mxu0 %v1675_v1  ;;  %1624 = vmatpush3.bf16.msra.mxu1 %v1675_v1  ;;  %v1680_v6 = vld [vmem:[%s2239_s1 + $0x60] sm:$0xff]   ;;  %v1682_v8 = vld [vmem:[%s2239_s1 + $0x58] sm:$0xff]   ;;  %s1925_s17 = scalar_lea.vmem %s2238_s0, %s1453_s25  ;;  %v1684_v10 = vld [vmem:[%s2239_s1 + $0x50] sm:$0xff]  }
  0x16   : > { %1458 = vmatprep.subr.bf16.mxu0 %v1676_v2  ;;  %1617 = vmatprep.subr.bf16.mxu1 %v1676_v2  ;;  %v1681_v7 = vld [vmem:[%s2239_s1 + $0x20] sm:$0xff]   ;;  %v1683_v9 = vld [vmem:[%s2239_s1 + $0x18] sm:$0xff]   ;;  %v339_v11 = vld [vmem:[%s1925_s17 + $0x8] sm:$0xff] }
  0x17   : > { %v341_v12 = vld [vmem:[%s1925_s17 + $0x18] sm:$0xff]  ;;  %v1685_v14 = vld [vmem:[%s2239_s1 + $0x10] sm:$0xff]   ;;  %v355_v15 = vld [vmem:[%s1925_s17 + $0x88] sm:$0xff] }
  0x18   : > { %v371_v13 = vpack.c.bf16 %v341_v12, %v339_v11  ;;  %v357_v16 = vld [vmem:[%s1925_s17 + $0x98] sm:$0xff]  ;;  %v1686_v17 = vld [vmem:[%s2239_s1 + $0x48] sm:$0xff]   ;;  %v1688_v20 = vld [vmem:[%s2239_s1 + $0x40] sm:$0xff]  }
  0x19   : > { %1459 = vmatpush3.bf16.msra.mxu0 %v1677_v3  ;;  %1625 = vmatpush3.bf16.msra.mxu1 %v1677_v3  ;;  %v379_v18 = vpack.c.bf16 %v357_v16, %v355_v15  ;;  %v1687_v19 = vld [vmem:[%s2239_s1 + $0x8] sm:$0xff]   ;;  %v1689_v21 = vld [vmem:[%s2239_s1] sm:$0xff]   ;;  %v340_v23 = vld [vmem:[%s1925_s17 + $0x10] sm:$0xff] }
  0x1a   : > { %1460 = vmatprep.subr.bf16.mxu0 %v1678_v4  ;;  %1618 = vmatprep.subr.bf16.mxu1 %v1678_v4  ;;  %v338_v22 = vld [vmem:[%s1925_s17] sm:$0xff]  ;;  %v343_v24 = vld [vmem:[%s1925_s17 + $0x28] sm:$0xff]  ;;  %v345_v25 = vld [vmem:[%s1925_s17 + $0x38] sm:$0xff] }
  0x1b   : > { %553 = vmatprep.mubr.bf16.mxu0 %v371_v13  ;;  %585 = vmatprep.mubr.bf16.mxu1 %v379_v18  ;;  %v354_v26 = vld [vmem:[%s1925_s17 + $0x80] sm:$0xff]  ;;  %v356_v27 = vld [vmem:[%s1925_s17 + $0x90] sm:$0xff]  ;;  %v359_v28 = vld [vmem:[%s1925_s17 + $0xa8] sm:$0xff]  ;;  %v370_v31 = vpack.c.bf16 %v340_v23, %v338_v22  ;;  %v373_v32 = vpack.c.bf16 %v345_v25, %v343_v24 }
  0x1c   : > { %v361_v29 = vld [vmem:[%s1925_s17 + $0xb8] sm:$0xff]  ;;  %v378_v33 = vpack.c.bf16 %v356_v27, %v354_v26  ;;  %v1691_v34 = vld [vmem:[%s2241_s3 + $0x30] sm:$0xff]   ;;  %v342_v36 = vld [vmem:[%s1925_s17 + $0x20] sm:$0xff] }
  0x1d   : > { %1461 = vmatpush3.bf16.msra.mxu0 %v1679_v5  ;;  %1626 = vmatpush3.bf16.msra.mxu1 %v1679_v5  ;;  %v1690_v30 = vld [vmem:[%s2241_s3 + $0x38] sm:$0xff]   ;;  %v381_v35 = vpack.c.bf16 %v361_v29, %v359_v28  ;;  %v344_v37 = vld [vmem:[%s1925_s17 + $0x30] sm:$0xff]  ;;  %v347_v38 = vld [vmem:[%s1925_s17 + $0x48] sm:$0xff] }
  0x1e   : > { %1462 = vmatprep.subr.bf16.mxu0 %v1680_v6  ;;  %1619 = vmatprep.subr.bf16.mxu1 %v1680_v6  ;;  %v349_v39 = vld [vmem:[%s1925_s17 + $0x58] sm:$0xff]  ;;  %v358_v40 = vld [vmem:[%s1925_s17 + $0xa0] sm:$0xff]  ;;  %v360_v41 = vld [vmem:[%s1925_s17 + $0xb0] sm:$0xff]  ;;  %v372_v45 = vpack.c.bf16 %v344_v37, %v342_v36 }
  0x1f   : > { %v363_v42 = vld [vmem:[%s1925_s17 + $0xc8] sm:$0xff]  ;;  %v365_v43 = vld [vmem:[%s1925_s17 + $0xd8] sm:$0xff]  ;;  %v375_v46 = vpack.c.bf16 %v349_v39, %v347_v38  ;;  %v380_v47 = vpack.c.bf16 %v360_v41, %v358_v40  ;;  %v346_v49 = vld [vmem:[%s1925_s17 + $0x40] sm:$0xff] }
  0x20   : > { %v1692_v44 = vld [vmem:[%s2241_s3 + $0x28] sm:$0xff]   ;;  %v383_v48 = vpack.c.bf16 %v365_v43, %v363_v42  ;;  %v348_v50 = vld [vmem:[%s1925_s17 + $0x50] sm:$0xff]  ;;  %v353_v52 = vld [vmem:[%s1925_s17 + $0x78] sm:$0xff] }
  0x21   : > { %1463 = vmatpush3.bf16.msra.mxu0 %v1681_v7  ;;  %1627 = vmatpush3.bf16.msra.mxu1 %v1681_v7  ;;  %v351_v51 = vld [vmem:[%s1925_s17 + $0x68] sm:$0xff]  ;;  %v362_v53 = vld [vmem:[%s1925_s17 + $0xc0] sm:$0xff]  ;;  %v364_v54 = vld [vmem:[%s1925_s17 + $0xd0] sm:$0xff]  ;;  %v374_v57 = vpack.c.bf16 %v348_v50, %v346_v49 }
  0x22   : > { %1464 = vmatprep.subr.bf16.mxu0 %v1682_v8  ;;  %1620 = vmatprep.subr.bf16.mxu1 %v1682_v8  ;;  %v367_v55 = vld [vmem:[%s1925_s17 + $0xe8] sm:$0xff]  ;;  %v369_v56 = vld [vmem:[%s1925_s17 + $0xf8] sm:$0xff]  ;;  %v377_v58 = vpack.c.bf16 %v353_v52, %v351_v51  ;;  %v382_v59 = vpack.c.bf16 %v364_v54, %v362_v53  ;;  %v350_v61 = vld [vmem:[%s1925_s17 + $0x60] sm:$0xff] }
  0x23   : > { %v385_v60 = vpack.c.bf16 %v369_v56, %v367_v55  ;;  %v352_v62 = vld [vmem:[%s1925_s17 + $0x70] sm:$0xff]  ;;  %v366_v63 = vld [vmem:[%s1925_s17 + $0xe0] sm:$0xff]  ;;  %v1694_v4 = vld [vmem:[%s2241_s3 + $0x18] sm:$0xff]  }
  0x24   : > { %v368_v0 = vld [vmem:[%s1925_s17 + $0xf0] sm:$0xff]  ;;  %v376_v1 = vpack.c.bf16 %v352_v62, %v350_v61  ;;  %v1693_v3 = vld [vmem:[%s2241_s3 + $0x20] sm:$0xff]   ;;  %v1696_v6 = vld [vmem:[%s2241_s3 + $0x8] sm:$0xff]   ;;  %s326_s17 = sand.u32 1, %s1782_s10  }
  0x25   : > { %1465 = vmatpush3.bf16.msra.mxu0 %v1683_v9  ;;  %1628 = vmatpush3.bf16.msra.mxu1 %v1683_v9  ;;  %v384_v2 = vpack.c.bf16 %v368_v0, %v366_v63  ;;  %v1695_v5 = vld [vmem:[%s2241_s3 + $0x10] sm:$0xff]   ;;  %v1697_v7 = vld [vmem:[%s2241_s3] sm:$0xff]   ;;  %v1698_v8 = vld [vmem:[%s2243_s5 + $0x38] sm:$0xff]   ;;  %s1392_s25 = sshll.u32 %s326_s17, 8  ;;  %s2198_s13 = scalar_lea.sflag [#allocation3], %s326_s17 }
  0x26   : > { %1466 = vmatprep.subr.bf16.mxu0 %v1684_v10  ;;  %1621 = vmatprep.subr.bf16.mxu1 %v1684_v10  ;;  %s2123_s26 = scalar_lea.vmem [#allocation2], %s1392_s25 }
  0x27   : > { %s1326_s28 = sshll.u32 %s2123_s26, 4  ;;  %s2192_s28 = int_to_ptr.vmem [resolvable:$true] %s1326_s28 }
  0x28   : > { %s1730_s23 = scalar_lea.vmem %s2192_s28, 4096  ;;  %p1737_p0 = scmp.lt.s32.totalorder %s2192_s28, %s1735_s22 }
  0x29   : > { %1467 = vmatpush3.bf16.msra.mxu0 %v1685_v14  ;;  %1629 = vmatpush3.bf16.msra.mxu1 %v1685_v14  ;;  %v2010_v14 = vld [vmem:[%s2240_s2] ss:$0 sm:$0xff]  ;;  %p1731_p11 = scmp.ne.s32.totalorder %s2192_s28, %s1730_s23  ;;  %p1738_p1 = scmp.lt.s32.totalorder %s1736_s24, %s1730_s23 }
  0x2a   : > { %1468 = vmatprep.subr.bf16.mxu0 %v1686_v17  ;;  %1622 = vmatprep.subr.bf16.mxu1 %v1686_v17 }
  0x2b   : > { %p1732_p12 = pnand %p1731_p11, %p1884_p5  ;;  %p1739_p2 = por %p1738_p1, %p1737_p0 }
  0x2d   : > { %1469 = vmatpush3.bf16.msra.mxu0 %v1687_v19  ;;  %1630 = vmatpush3.bf16.msra.mxu1 %v1687_v19  ;;  %p1733_p13 = pneg %p1732_p12 }
  0x2e   : > { %1470 = vmatprep.subr.bf16.mxu0 %v1688_v20  ;;  %1623 = vmatprep.subr.bf16.mxu1 %v1688_v20 }
  0x2f   : > { %p1740_p3 = pnand %p1739_p2, %p1733_p13 }
  0x31   : > { %1471 = vmatpush3.bf16.msra.mxu0 %v1689_v21  ;;  %1631 = vmatpush3.bf16.msra.mxu1 %v1689_v21 }
  0x32   : > { %1552 = vmatprep.subr.bf16.mxu1 %v1690_v30 }
  0x34   : > { %554 = vmatmul.mubr.bf16.vlgmr.msra.gmra.mxu0 %v370_v31  ;;  %586 = vmatmul.mubr.bf16.vlgmr.msra.gmra.mxu1 %v378_v33 }
  0x35   : > { %561 = vmatprep.mubr.bf16.mxu0 %v373_v32  ;;  %593 = vmatprep.mubr.bf16.mxu1 %v381_v35 }
  0x36   : > { %1553 = vmatpush3.bf16.msra.mxu1 %v1690_v30 }
  0x37   : > { %1554 = vmatprep.subr.bf16.mxu1 %v1691_v34 }
  0x3a   : > { %1555 = vmatpush3.bf16.msra.mxu1 %v1691_v34 }
  0x3b   : > { %1556 = vmatprep.subr.bf16.mxu1 %v1692_v44 }
  0x3c   : > { %562 = vmatmul.mubr.bf16.gmra.mxu0 %v372_v45  ;;  %594 = vmatmul.mubr.bf16.gmra.mxu1 %v380_v47  ;;  %v1699_v47 = vld [vmem:[%s2243_s5 + $0x30] sm:$0xff]  }
  0x3d   : > { %569 = vmatprep.mubr.bf16.mxu0 %v375_v46  ;;  %601 = vmatprep.mubr.bf16.mxu1 %v383_v48 }
  0x3e   : > { %1557 = vmatpush3.bf16.msra.mxu1 %v1692_v44 }
  0x3f   : > { %1558 = vmatprep.subr.bf16.mxu1 %v1693_v3 }
  0x42   : > { %1559 = vmatpush3.bf16.msra.mxu1 %v1693_v3  ;;  %v1701_v3 = vld [vmem:[%s2243_s5 + $0x20] sm:$0xff]  }
  0x43   : > { %1560 = vmatprep.subr.bf16.mxu1 %v1694_v4 }
  0x44   : > { %570 = vmatmul.mubr.bf16.gmra.mxu0 %v374_v57  ;;  %602 = vmatmul.mubr.bf16.gmra.mxu1 %v382_v59  ;;  %v1700_v57 = vld [vmem:[%s2243_s5 + $0x28] sm:$0xff]  }
  0x45   : > { %577 = vmatprep.mubr.bf16.mxu0 %v377_v58  ;;  %609 = vmatprep.mubr.bf16.mxu1 %v385_v60 }
  0x46   : > { %1561 = vmatpush3.bf16.msra.mxu1 %v1694_v4 }
  0x47   : > { %1562 = vmatprep.subr.bf16.mxu1 %v1695_v5 }
  0x4a   : > { %1563 = vmatpush3.bf16.msra.mxu1 %v1695_v5 }
  0x4b   : > { %1564 = vmatprep.subr.bf16.mxu1 %v1696_v6 }
  0x4c   : > { %578 = vmatmul.mubr.bf16.gmra.mxu0 %v376_v1  ;;  %610 = vmatmul.mubr.bf16.gmra.mxu1 %v384_v2 }
  0x4e   : > { %1565 = vmatpush3.bf16.msra.mxu1 %v1696_v6 }
  0x4f   : > { %1566 = vmatprep.subr.bf16.mxu1 %v1697_v7 }
  0x52   : > { %1567 = vmatpush3.bf16.msra.mxu1 %v1697_v7 }
  0x53   : > { %1584 = vmatprep.subr.bf16.mxu1 %v1698_v8 }
  0xf4   : > { %v1472_v9 = vpop.f32.mrf.mxu0  ;;  %v1496_v10 = vpop.f32.mrf.mxu1 }
  0xf6   : > { %v1473_v11 = vpop.f32.mrf.mxu0  ;;  %v1497_v13 = vpop.f32.mrf.mxu1 }
  0xf7   : > { %v1474_v12 = vadd.f32 %v1473_v11, %v1472_v9  ;;  %v1498_v52 = vadd.f32 %v1497_v13, %v1496_v10 }
  0xf8   : > { %v1475_v15 = vpop.f32.mrf.mxu0  ;;  %v1499_v16 = vpop.f32.mrf.mxu1 }
  0xf9   : > { %v556_v18 = vadd.f32 %v1474_v12, %v2010_v14  ;;  %v588_v62 = vadd.f32 %v1498_v52, %v2010_v14 }
  0xfa   : > { %v1476_v17 = vpop.f32.mrf.mxu0  ;;  %v1500_v20 = vpop.f32.mrf.mxu1 }
  0xfb   : > { %v1477_v19 = vadd.f32 %v1476_v17, %v1475_v15  ;;  %v618_v25 = vmax.f32 %v556_v18, 0.0  ;;  %v1501_v53 = vadd.f32 %v1500_v20, %v1499_v16  ;;  %v626_v9 = vmax.f32 %v588_v62, 0.0  ;;  %v1702_v16 = vld [vmem:[%s2243_s5 + $0x18] sm:$0xff]  }
  0xfc   : > { %v1478_v21 = vpop.f32.mrf.mxu0  ;;  %v1502_v23 = vpop.f32.mrf.mxu1 }
  0xfd   : > { %v559_v22 = vadd.f32 %v1477_v19, %v2010_v14  ;;  %v591_v63 = vadd.f32 %v1501_v53, %v2010_v14  ;;  %v1413_v53 = vld [vmem:[%s2242_s4] ss:$0 sm:$0xff] }
  0xfe   : > { %v1479_v24 = vpop.f32.mrf.mxu0  ;;  %v1503_v28 = vpop.f32.mrf.mxu1 }
  0xff   : > { %v619_v26 = vmax.f32 %v559_v22, 0.0  ;;  %v1480_v27 = vadd.f32 %v1479_v24, %v1478_v21  ;;  %v1504_v6 = vadd.f32 %v1503_v28, %v1502_v23  ;;  %v627_v10 = vmax.f32 %v591_v63, 0.0 }
 0x100   : > { %v1481_v29 = vpop.f32.mrf.mxu0  ;;  %v1505_v31 = vpop.f32.mrf.mxu1 }
 0x101   : > { %v634_v30 = vpack.c.bf16 %v619_v26, %v618_v25  ;;  %v564_v33 = vadd.f32 %v1480_v27, %v2010_v14  ;;  %v596_v18 = vadd.f32 %v1504_v6, %v2010_v14  ;;  %v638_v23 = vpack.c.bf16 %v627_v10, %v626_v9 }
 0x102   : > { %v1482_v32 = vpop.f32.mrf.mxu0  ;;  %v1506_v35 = vpop.f32.mrf.mxu1 }
 0x103   : > { %v1483_v34 = vadd.f32 %v1482_v32, %v1481_v29  ;;  %1568 = vmatprep.mubr.bf16.mxu1 %v634_v30  ;;  %v620_v40 = vmax.f32 %v564_v33, 0.0  ;;  %v628_v26 = vmax.f32 %v596_v18, 0.0 }
 0x104   : > { %v1484_v36 = vpop.f32.mrf.mxu0  ;;  %v1508_v38 = vpop.f32.mrf.mxu1 }
 0x105   : > { %v567_v37 = vadd.f32 %v1483_v34, %v2010_v14 }
 0x106   : > { %v1485_v39 = vpop.f32.mrf.mxu0  ;;  %v1509_v43 = vpop.f32.mrf.mxu1 }
 0x107   : > { %v621_v41 = vmax.f32 %v567_v37, 0.0  ;;  %v1486_v42 = vadd.f32 %v1485_v39, %v1484_v36  ;;  %v1510_v11 = vadd.f32 %v1509_v43, %v1508_v38  ;;  %v1703_v39 = vld [vmem:[%s2243_s5 + $0x10] sm:$0xff]   ;;  %v1711_v43 = vld [vmem:[%s2245_s7 + $0x64] ss:$8 sps:$4 sm:$0xff]  }
 0x108   : > { %v1487_v44 = vpop.f32.mrf.mxu0  ;;  %v1511_v46 = vpop.f32.mrf.mxu1 }
 0x109   : > { %v635_v45 = vpack.c.bf16 %v621_v41, %v620_v40  ;;  %v572_v49 = vadd.f32 %v1486_v42, %v2010_v14  ;;  %v604_v21 = vadd.f32 %v1510_v11, %v2010_v14  ;;  %v1704_v40 = vld [vmem:[%s2243_s5 + $0x8] sm:$0xff]   ;;  %v1706_v41 = vld [vmem:[%s2245_s7 + $0x70] ss:$8 sps:$4 sm:$0xff]   ;;  %v1708_v42 = vld [vmem:[%s2245_s7 + $0x74] ss:$8 sps:$4 sm:$0xff]  }
 0x10a   : > { %v1488_v48 = vpop.f32.mrf.mxu0  ;;  %v1512_v51 = vpop.f32.mrf.mxu1  ;;  %1134 = vmatprep.subr.bf16.mxu0 %v1708_v42 }
 0x10b   : > { %v1489_v50 = vadd.f32 %v1488_v48, %v1487_v44  ;;  %1569 = vmatmul.mubr.bf16.vlgmr.msra.gmra.mxu1 %v635_v45  ;;  %v622_v59 = vmax.f32 %v572_v49, 0.0  ;;  %v1513_v12 = vadd.f32 %v1512_v51, %v1511_v46  ;;  %v630_v30 = vmax.f32 %v604_v21, 0.0  ;;  %1135 = vmatpush1.bf16.msra.mxu0 %v1706_v41  ;;  %v1709_v44 = vld [vmem:[%s2245_s7 + $0x60] ss:$8 sps:$4 sm:$0xff]   ;;  %v1714_v45 = vld [vmem:[%s2245_s7 + $0x54] ss:$8 sps:$4 sm:$0xff]  }
 0x10c   : > { %v1490_v54 = vpop.f32.mrf.mxu0  ;;  %1585 = vmatpush3.bf16.msra.mxu1 %v1698_v8  ;;  %v1514_v56 = vpop.f32.mrf.mxu1  ;;  %v1507_v8 = vadd.f32 %v1506_v35, %v1505_v31  ;;  %1136 = vmatprep.subr.bf16.mxu0 %v1711_v43  ;;  %v1712_v46 = vld [vmem:[%s2245_s7 + $0x50] ss:$8 sps:$4 sm:$0xff]   ;;  %v1715_v48 = vld [vmem:[%s2245_s7 + $0x40] ss:$8 sps:$4 sm:$0xff]   ;;  %v1720_v49 = vld [vmem:[%s2245_s7 + $0x34] ss:$8 sps:$4 sm:$0xff]  }
 0x10d   : > { %v575_v55 = vadd.f32 %v1489_v50, %v2010_v14  ;;  %1586 = vmatprep.subr.bf16.mxu1 %v1699_v47  ;;  %v607_v22 = vadd.f32 %v1513_v12, %v2010_v14  ;;  %v1718_v50 = vld [vmem:[%s2245_s7 + $0x30] ss:$8 sps:$4 sm:$0xff]  }
 0x10e   : > { %v1491_v58 = vpop.f32.mrf.mxu0  ;;  %v1515_v1 = vpop.f32.mrf.mxu1  ;;  %v599_v20 = vadd.f32 %v1507_v8, %v2010_v14 }
 0x10f   : > { %v623_v60 = vmax.f32 %v575_v55, 0.0  ;;  %v1492_v61 = vadd.f32 %v1491_v58, %v1490_v54  ;;  %v1516_v28 = vadd.f32 %v1515_v1, %v1514_v56  ;;  %v631_v31 = vmax.f32 %v607_v22, 0.0  ;;  %1137 = vmatpush1.bf16.msra.mxu0 %v1709_v44  ;;  %v1723_v44 = vld [vmem:[%s2245_s7 + $0x24] ss:$8 sps:$4 sm:$0xff]  }
 0x110   : > { %v1493_v0 = vpop.f32.mrf.mxu0  ;;  %1587 = vmatpush3.bf16.msra.mxu1 %v1699_v47  ;;  %v1517_v13 = vpop.f32.mrf.mxu1  ;;  %v629_v27 = vmax.f32 %v599_v20, 0.0  ;;  %1138 = vmatprep.subr.bf16.mxu0 %v1714_v45  ;;  %v1717_v47 = vld [vmem:[%s2245_s7 + $0x44] ss:$8 sps:$4 sm:$0xff]   ;;  %v1721_v45 = vld [vmem:[%s2245_s7 + $0x20] ss:$8 sps:$4 sm:$0xff]  }
 0x111   : > { %v636_v2 = vpack.c.bf16 %v623_v60, %v622_v59  ;;  %1588 = vmatprep.subr.bf16.mxu1 %v1700_v57  ;;  %v580_v5 = vadd.f32 %v1492_v61, %v2010_v14  ;;  %v612_v32 = vadd.f32 %v1516_v28, %v2010_v14  ;;  %v640_v35 = vpack.c.bf16 %v631_v31, %v630_v30 }
 0x112   : > { %v1494_v4 = vpop.f32.mrf.mxu0  ;;  %v1518_v24 = vpop.f32.mrf.mxu1  ;;  %v639_v34 = vpack.c.bf16 %v629_v27, %v628_v26 }
 0x113   : > { %v1495_v7 = vadd.f32 %v1494_v4, %v1493_v0  ;;  %1572 = vmatprep.mubr.bf16.mxu1 %v636_v2  ;;  %v624_v17 = vmax.f32 %v580_v5, 0.0  ;;  %v1519_v29 = vadd.f32 %v1518_v24, %v1517_v13  ;;  %v632_v36 = vmax.f32 %v612_v32, 0.0  ;;  %1139 = vmatpush1.bf16.msra.mxu0 %v1712_v46  ;;  %v1726_v46 = vld [vmem:[%s2245_s7 + $0x14] ss:$8 sps:$4 sm:$0xff]  }
 0x114   : > { %1589 = vmatpush3.bf16.msra.mxu1 %v1700_v57  ;;  %1140 = vmatprep.subr.bf16.mxu0 %v1717_v47  ;;  %v1724_v47 = vld [vmem:[%s2245_s7 + $0x10] ss:$8 sps:$4 sm:$0xff]  }
 0x115   : > { %v583_v15 = vadd.f32 %v1495_v7, %v2010_v14  ;;  %1590 = vmatprep.subr.bf16.mxu1 %v1701_v3  ;;  %v615_v33 = vadd.f32 %v1519_v29, %v2010_v14  ;;  %v1705_v14 = vld [vmem:[%s2243_s5] sm:$0xff]  }
 0x117   : > { %v625_v19 = vmax.f32 %v583_v15, 0.0  ;;  %v633_v37 = vmax.f32 %v615_v33, 0.0  ;;  %1141 = vmatpush1.bf16.msra.mxu0 %v1715_v48  ;;  %v1729_v48 = vld [vmem:[%s2245_s7 + $0x4] ss:$8 sps:$4 sm:$0xff]  }
 0x118   : > { %1591 = vmatpush3.bf16.msra.mxu1 %v1701_v3  ;;  %1142 = vmatprep.subr.bf16.mxu0 %v1720_v49  ;;  %v1727_v49 = vld [vmem:[%s2245_s7] ss:$8 sps:$4 sm:$0xff]  }
 0x119   : > { %v637_v25 = vpack.c.bf16 %v625_v19, %v624_v17  ;;  %1592 = vmatprep.subr.bf16.mxu1 %v1702_v16  ;;  %v641_v38 = vpack.c.bf16 %v633_v37, %v632_v36 }
 0x11b   : > { %1573 = vmatmul.mubr.bf16.gmra.mxu1 %v637_v25  ;;  %1143 = vmatpush1.bf16.msra.mxu0 %v1718_v50  ;;  %v1792_v50 = vmov 0  }
 0x11c   : > { %1576 = vmatprep.mubr.bf16.mxu1 %v638_v23  ;;  %1593 = vmatpush3.bf16.msra.mxu1 %v1702_v16 }
 0x11d   : > { %1594 = vmatprep.subr.bf16.mxu1 %v1703_v39  ;;  %1144 = vmatprep.subr.bf16.mxu0 %v1723_v44  ;;  %v1044_v44 = vlaneseq }
 0x11e   : > { %1166 = vmatprep.mubr.bf16.mxu0 %v1792_v50 }
 0x11f   : > { %1145 = vmatpush1.bf16.msra.mxu0 %v1721_v45  ;;  %v1045_v45 = vshrl.u32 %v1044_v44, 7 }
 0x120   : > { %1595 = vmatpush3.bf16.msra.mxu1 %v1703_v39  ;;  %1146 = vmatprep.subr.bf16.mxu0 %v1726_v46 }
 0x121   : > { %1596 = vmatprep.subr.bf16.mxu1 %v1704_v40  ;;  %v1046_v46 = vsub.s32 0, %v1045_v45 }
 0x123   : > { %1577 = vmatmul.mubr.bf16.gmra.mxu1 %v639_v34  ;;  %1147 = vmatpush1.bf16.msra.mxu0 %v1724_v47  ;;  %v1042_v47 = vld [vmem:[%s2246_s8] sm:$0x3] }
 0x124   : > { %1580 = vmatprep.mubr.bf16.mxu1 %v640_v35  ;;  %1597 = vmatpush3.bf16.msra.mxu1 %v1704_v40 }
 0x125   : > { %1598 = vmatprep.subr.bf16.mxu1 %v1705_v14  ;;  %1148 = vmatprep.subr.bf16.mxu0 %v1729_v48  ;;  %v1050_v48 = vsub.s32 1, %v1045_v45 }
 0x127   : > { %1149 = vmatpush1.bf16.msra.mxu0 %v1727_v49  ;;  %v2115_v49 = vrot.slane %v1042_v47, %v1046_v46 }
 0x128   : > { %1599 = vmatpush3.bf16.msra.mxu1 %v1705_v14 }
 0x12b   : > { %1581 = vmatmul.mubr.bf16.gmra.mxu1 %v641_v38 }
 0x1cb   : > { %v1570_v51 = vpop.f32.mrf.mxu1 }
 0x1cc   : > { %v756_v57 = vadd.f32 %v1570_v51, %v1413_v53 }
 0x1cd   : > { %v747_v52 = vpop.f32.mrf.mxu1 }
 0x1ce   : > { %v748_v55 = vadd.f32 %v1413_v53, %v747_v52  ;;  %v812_v63 = vmax.f32 %v756_v57, 0.0 }
 0x1cf   : > { %v1571_v54 = vpop.f32.mrf.mxu1 }
 0x1d0   : > { %v759_v56 = vadd.f32 %v1571_v54, %v1413_v53  ;;  %v810_v61 = vmax.f32 %v748_v55, 0.0 }
 0x1d1   : > { %v750_v58 = vpop.f32.mrf.mxu1 }
 0x1d2   : > { %v751_v59 = vadd.f32 %v1413_v53, %v750_v58  ;;  %v813_v60 = vmax.f32 %v759_v56, 0.0 }
 0x1d4   : > { %v811_v62 = vmax.f32 %v751_v59, 0.0  ;;  %v827_v1 = vpack.c.bf16 %v813_v60, %v812_v63 }
 0x1d6   : > { %v826_v0 = vpack.c.bf16 %v811_v62, %v810_v61 }
 0x1d8   : > { %1600 = vmatprep.mubr.bf16.mxu1 %v826_v0 }
 0x1d9   : > { %1601 = vmatmul.mubr.bf16.vlgmr.msra.gmra.mxu1 %v827_v1 }
 0x1db   : > { %v1574_v2 = vpop.f32.mrf.mxu1 }
 0x1dc   : > { %v772_v7 = vadd.f32 %v1574_v2, %v1413_v53 }
 0x1dd   : > { %v763_v3 = vpop.f32.mrf.mxu1 }
 0x1de   : > { %v764_v5 = vadd.f32 %v1413_v53, %v763_v3  ;;  %v816_v15 = vmax.f32 %v772_v7, 0.0 }
 0x1df   : > { %v1575_v4 = vpop.f32.mrf.mxu1 }
 0x1e0   : > { %v775_v6 = vadd.f32 %v1575_v4, %v1413_v53  ;;  %v814_v12 = vmax.f32 %v764_v5, 0.0 }
 0x1e1   : > { %v766_v8 = vpop.f32.mrf.mxu1 }
 0x1e2   : > { %v767_v9 = vadd.f32 %v1413_v53, %v766_v8  ;;  %v817_v10 = vmax.f32 %v775_v6, 0.0 }
 0x1e3   : > { %v1578_v11 = vpop.f32.mrf.mxu1 }
 0x1e4   : > { %v815_v13 = vmax.f32 %v767_v9, 0.0  ;;  %v829_v18 = vpack.c.bf16 %v817_v10, %v816_v15  ;;  %v788_v22 = vadd.f32 %v1578_v11, %v1413_v53 }
 0x1e5   : > { %v779_v16 = vpop.f32.mrf.mxu1 }
 0x1e6   : > { %v828_v17 = vpack.c.bf16 %v815_v13, %v814_v12  ;;  %v780_v20 = vadd.f32 %v1413_v53, %v779_v16  ;;  %v820_v29 = vmax.f32 %v788_v22, 0.0 }
 0x1e7   : > { %v1579_v19 = vpop.f32.mrf.mxu1 }
 0x1e8   : > { %v791_v21 = vadd.f32 %v1579_v19, %v1413_v53  ;;  %1604 = vmatprep.mubr.bf16.mxu1 %v828_v17  ;;  %v818_v27 = vmax.f32 %v780_v20, 0.0 }
 0x1e9   : > { %v782_v23 = vpop.f32.mrf.mxu1  ;;  %1605 = vmatmul.mubr.bf16.gmra.mxu1 %v829_v18 }
 0x1ea   : > { %v783_v24 = vadd.f32 %v1413_v53, %v782_v23  ;;  %v821_v25 = vmax.f32 %v791_v21, 0.0 }
 0x1eb   : > { %v1582_v26 = vpop.f32.mrf.mxu1 }
 0x1ec   : > { %v819_v28 = vmax.f32 %v783_v24, 0.0  ;;  %v804_v30 = vadd.f32 %v1582_v26, %v1413_v53  ;;  %v831_v34 = vpack.c.bf16 %v821_v25, %v820_v29 }
 0x1ed   : > { %v795_v31 = vpop.f32.mrf.mxu1 }
 0x1ee   : > { %v830_v32 = vpack.c.bf16 %v819_v28, %v818_v27  ;;  %v796_v33 = vadd.f32 %v1413_v53, %v795_v31  ;;  %v824_v37 = vmax.f32 %v804_v30, 0.0 }
 0x1ef   : > { %v1583_v35 = vpop.f32.mrf.mxu1 }
 0x1f0   : > { %v807_v36 = vadd.f32 %v1583_v35, %v1413_v53  ;;  %1608 = vmatprep.mubr.bf16.mxu1 %v830_v32  ;;  %v822_v39 = vmax.f32 %v796_v33, 0.0 }
 0x1f1   : > { %v798_v38 = vpop.f32.mrf.mxu1  ;;  %1609 = vmatmul.mubr.bf16.gmra.mxu1 %v831_v34 }
 0x1f2   : > { %v825_v40 = vmax.f32 %v807_v36, 0.0  ;;  %v799_v14 = vadd.f32 %v1413_v53, %v798_v38  ;;  %v1422_v53 = vld [vmem:[%s2244_s6] ss:$0 sm:$0xff] }
 0x1f4   : > { %v823_v41 = vmax.f32 %v799_v14, 0.0  ;;  %v833_v42 = vpack.c.bf16 %v825_v40, %v824_v37 }
 0x1f6   : > { %v832_v43 = vpack.c.bf16 %v823_v41, %v822_v39 }
 0x1f8   : > { %1612 = vmatprep.mubr.bf16.mxu1 %v832_v43 }
 0x1f9   : > { %1613 = vmatmul.mubr.bf16.gmra.mxu1 %v833_v42 }
 0x299   : > { %v1602_v51 = vpop.f32.mrf.mxu1 }
 0x29a   : > { %v948_v62 = vadd.f32 %v1602_v51, %v1422_v53  ;;  %v2119_v51 = vrot.slane %v1042_v47, %v1050_v48 }
 0x29b   : > { %v939_v52 = vpop.f32.mrf.mxu1 }
 0x29c   : > { %v940_v55 = vadd.f32 %v1422_v53, %v939_v52  ;;  %v1004_v1 = vmax.f32 %v948_v62, 0.0 }
 0x29d   : > { %v1603_v54 = vpop.f32.mrf.mxu1 }
 0x29e   : > { %v1002_v58 = vmax.f32 %v940_v55, 0.0  ;;  %v951_v60 = vadd.f32 %v1603_v54, %v1422_v53 }
 0x29f   : > { %v942_v56 = vpop.f32.mrf.mxu1 }
 0x2a0   : > { %v943_v57 = vadd.f32 %v1422_v53, %v942_v56  ;;  %v1005_v63 = vmax.f32 %v951_v60, 0.0 }
 0x2a2   : > { %v1003_v59 = vmax.f32 %v943_v57, 0.0  ;;  %v1019_v3 = vpack.c.bf16 %v1005_v63, %v1004_v1 }
 0x2a4   : > { %v1018_v61 = vpack.c.bf16 %v1003_v59, %v1002_v58 }
 0x2a6   : > { %1167 = vmatmul.mubr.bf16.vlgmr.msra.gmra.mxu0 %v1018_v61 }
 0x2a7   : > { %1176 = vmatprep.mubr.bf16.mxu0 %v1792_v50 }
 0x2a9   : > { %v1606_v0 = vpop.f32.mrf.mxu1 }
 0x2aa   : > { %v964_v16 = vadd.f32 %v1606_v0, %v1422_v53 }
 0x2ab   : > { %v955_v2 = vpop.f32.mrf.mxu1 }
 0x2ac   : > { %v956_v5 = vadd.f32 %v1422_v53, %v955_v2  ;;  %v1008_v19 = vmax.f32 %v964_v16, 0.0 }
 0x2ad   : > { %v1607_v4 = vpop.f32.mrf.mxu1 }
 0x2ae   : > { %1177 = vmatmul.mubr.bf16.gmra.mxu0 %v1019_v3  ;;  %v1006_v9 = vmax.f32 %v956_v5, 0.0  ;;  %v967_v12 = vadd.f32 %v1607_v4, %v1422_v53 }
 0x2af   : > { %v958_v6 = vpop.f32.mrf.mxu1  ;;  %1186 = vmatprep.mubr.bf16.mxu0 %v1792_v50 }
 0x2b0   : > { %v959_v7 = vadd.f32 %v1422_v53, %v958_v6  ;;  %v1009_v17 = vmax.f32 %v967_v12, 0.0 }
 0x2b1   : > { %v1610_v8 = vpop.f32.mrf.mxu1 }
 0x2b2   : > { %v1007_v10 = vmax.f32 %v959_v7, 0.0  ;;  %v1021_v20 = vpack.c.bf16 %v1009_v17, %v1008_v19  ;;  %v980_v30 = vadd.f32 %v1610_v8, %v1422_v53 }
 0x2b3   : > { %v971_v11 = vpop.f32.mrf.mxu1 }
 0x2b4   : > { %v1020_v13 = vpack.c.bf16 %v1007_v10, %v1006_v9  ;;  %v972_v23 = vadd.f32 %v1422_v53, %v971_v11  ;;  %v1012_v33 = vmax.f32 %v980_v30, 0.0 }
 0x2b5   : > { %v1611_v15 = vpop.f32.mrf.mxu1 }
 0x2b6   : > { %1187 = vmatmul.mubr.bf16.gmra.mxu0 %v1020_v13  ;;  %v1010_v26 = vmax.f32 %v972_v23, 0.0  ;;  %v983_v27 = vadd.f32 %v1611_v15, %v1422_v53 }
 0x2b7   : > { %1196 = vmatprep.mubr.bf16.mxu0 %v1792_v50  ;;  %v974_v18 = vpop.f32.mrf.mxu1 }
 0x2b8   : > { %v975_v21 = vadd.f32 %v1422_v53, %v974_v18  ;;  %v1013_v31 = vmax.f32 %v983_v27, 0.0 }
 0x2b9   : > { %v1614_v22 = vpop.f32.mrf.mxu1 }
 0x2ba   : > { %v1011_v24 = vmax.f32 %v975_v21, 0.0  ;;  %v1023_v34 = vpack.c.bf16 %v1013_v31, %v1012_v33  ;;  %v996_v39 = vadd.f32 %v1614_v22, %v1422_v53 }
 0x2bb   : > { %v987_v25 = vpop.f32.mrf.mxu1 }
 0x2bc   : > { %v1022_v28 = vpack.c.bf16 %v1011_v24, %v1010_v26  ;;  %v988_v36 = vadd.f32 %v1422_v53, %v987_v25  ;;  %v1016_v41 = vmax.f32 %v996_v39, 0.0 }
 0x2bd   : > { %v1615_v29 = vpop.f32.mrf.mxu1 }
 0x2be   : > { %1197 = vmatmul.mubr.bf16.gmra.mxu0 %v1021_v20  ;;  %v1014_v38 = vmax.f32 %v988_v36, 0.0  ;;  %v999_v40 = vadd.f32 %v1615_v29, %v1422_v53 }
 0x2bf   : > { %1206 = vmatprep.mubr.bf16.mxu0 %v1792_v50  ;;  %v990_v32 = vpop.f32.mrf.mxu1 }
 0x2c0   : > { %v991_v35 = vadd.f32 %v1422_v53, %v990_v32  ;;  %v1017_v42 = vmax.f32 %v999_v40, 0.0 }
 0x2c2   : > { %v1015_v37 = vmax.f32 %v991_v35, 0.0  ;;  %v1025_v43 = vpack.c.bf16 %v1017_v42, %v1016_v41 }
 0x2c4   : > { %v1024_v14 = vpack.c.bf16 %v1015_v37, %v1014_v38 }
 0x2c6   : > { %1207 = vmatmul.mubr.bf16.gmra.mxu0 %v1022_v28 }
 0x2c7   : > { %1216 = vmatprep.mubr.bf16.mxu0 %v1792_v50 }
 0x2ce   : > { %1217 = vmatmul.mubr.bf16.gmra.mxu0 %v1023_v34 }
 0x2cf   : > { %1226 = vmatprep.mubr.bf16.mxu0 %v1792_v50 }
 0x2d6   : > { %1227 = vmatmul.mubr.bf16.gmra.mxu0 %v1024_v14 }
 0x2d7   : > { %1236 = vmatprep.mubr.bf16.mxu0 %v1792_v50 }
 0x2de   : > { %1237 = vmatmul.mubr.bf16.gmra.mxu0 %v1025_v43 }
 0x366   : > { %v1168_v50 = vpop.f32.mrf.mxu0 }
 0x367   : > { %v1169_v52 = vadd.f32 %v1168_v50, %v2115_v49 }
 0x368   : > { %v1170_v53 = vpop.f32.mrf.mxu0 }
 0x369   : > { %v1247_v54 = vmax.f32 %v1169_v52, 0.0  ;;  %v1171_v55 = vadd.f32 %v1170_v53, %v2119_v51 }
 0x36a   : > { %v1172_v56 = vpop.f32.mrf.mxu0 }
 0x36b   : > { %1279 = vst [vmem:[%s2123_s26] sm:$0xff] %v1247_v54  ;;  %v1248_v57 = vmax.f32 %v1171_v55, 0.0  ;;  %v1173_v58 = vadd.f32 %v1172_v56, %v2115_v49 }
 0x36c   : > { %v1174_v59 = vpop.f32.mrf.mxu0 }
 0x36d   : > { %1280 = vst [vmem:[%s2123_s26 + $0x8] sm:$0xff] %v1248_v57  ;;  %v1249_v60 = vmax.f32 %v1173_v58, 0.0  ;;  %v1175_v61 = vadd.f32 %v1174_v59, %v2119_v51 }
 0x36e   : > { %v1178_v62 = vpop.f32.mrf.mxu0 }
 0x36f   : > { %1281 = vst [vmem:[%s2123_s26 + $0x10] sm:$0xff] %v1249_v60  ;;  %v1250_v63 = vmax.f32 %v1175_v61, 0.0  ;;  %v1179_v0 = vadd.f32 %v1178_v62, %v2115_v49 }
 0x370   : > { %v1180_v1 = vpop.f32.mrf.mxu0 }
 0x371   : > { %1282 = vst [vmem:[%s2123_s26 + $0x18] sm:$0xff] %v1250_v63  ;;  %v1251_v2 = vmax.f32 %v1179_v0, 0.0  ;;  %v1181_v3 = vadd.f32 %v1180_v1, %v2119_v51 }
 0x372   : > { %v1182_v4 = vpop.f32.mrf.mxu0 }
 0x373   : > { %1283 = vst [vmem:[%s2123_s26 + $0x20] sm:$0xff] %v1251_v2  ;;  %v1252_v5 = vmax.f32 %v1181_v3, 0.0  ;;  %v1183_v6 = vadd.f32 %v1182_v4, %v2115_v49 }
 0x374   : > { %v1184_v7 = vpop.f32.mrf.mxu0 }
 0x375   : > { %1284 = vst [vmem:[%s2123_s26 + $0x28] sm:$0xff] %v1252_v5  ;;  %v1253_v8 = vmax.f32 %v1183_v6, 0.0  ;;  %v1185_v9 = vadd.f32 %v1184_v7, %v2119_v51 }
 0x376   : > { %v1188_v10 = vpop.f32.mrf.mxu0 }
 0x377   : > { %1285 = vst [vmem:[%s2123_s26 + $0x30] sm:$0xff] %v1253_v8  ;;  %v1254_v11 = vmax.f32 %v1185_v9, 0.0  ;;  %v1189_v12 = vadd.f32 %v1188_v10, %v2115_v49 }
 0x378   : > { %v1190_v13 = vpop.f32.mrf.mxu0 }
 0x379   : > { %1286 = vst [vmem:[%s2123_s26 + $0x38] sm:$0xff] %v1254_v11  ;;  %v1255_v15 = vmax.f32 %v1189_v12, 0.0  ;;  %v1191_v16 = vadd.f32 %v1190_v13, %v2119_v51 }
 0x37a   : > { %v1192_v17 = vpop.f32.mrf.mxu0 }
 0x37b   : > { %1287 = vst [vmem:[%s2123_s26 + $0x40] sm:$0xff] %v1255_v15  ;;  %v1256_v18 = vmax.f32 %v1191_v16, 0.0  ;;  %v1193_v19 = vadd.f32 %v1192_v17, %v2115_v49 }
 0x37c   : > { %v1194_v20 = vpop.f32.mrf.mxu0 }
 0x37d   : > { %1288 = vst [vmem:[%s2123_s26 + $0x48] sm:$0xff] %v1256_v18  ;;  %v1257_v21 = vmax.f32 %v1193_v19, 0.0  ;;  %v1195_v22 = vadd.f32 %v1194_v20, %v2119_v51 }
 0x37e   : > { %v1198_v23 = vpop.f32.mrf.mxu0 }
 0x37f   : > { %1289 = vst [vmem:[%s2123_s26 + $0x50] sm:$0xff] %v1257_v21  ;;  %v1258_v24 = vmax.f32 %v1195_v22, 0.0  ;;  %v1199_v25 = vadd.f32 %v1198_v23, %v2115_v49 }
 0x380   : > { %v1200_v26 = vpop.f32.mrf.mxu0 }
 0x381   : > { %1290 = vst [vmem:[%s2123_s26 + $0x58] sm:$0xff] %v1258_v24  ;;  %v1259_v27 = vmax.f32 %v1199_v25, 0.0  ;;  %v1201_v28 = vadd.f32 %v1200_v26, %v2119_v51 }
 0x382   : > { %v1202_v29 = vpop.f32.mrf.mxu0 }
 0x383   : > { %1291 = vst [vmem:[%s2123_s26 + $0x60] sm:$0xff] %v1259_v27  ;;  %v1260_v30 = vmax.f32 %v1201_v28, 0.0  ;;  %v1203_v31 = vadd.f32 %v1202_v29, %v2115_v49 }
 0x384   : > { %v1204_v32 = vpop.f32.mrf.mxu0 }
 0x385   : > { %1292 = vst [vmem:[%s2123_s26 + $0x68] sm:$0xff] %v1260_v30  ;;  %v1261_v33 = vmax.f32 %v1203_v31, 0.0  ;;  %v1205_v34 = vadd.f32 %v1204_v32, %v2119_v51 }
 0x386   : > { %v1208_v35 = vpop.f32.mrf.mxu0 }
 0x387   : > { %1293 = vst [vmem:[%s2123_s26 + $0x70] sm:$0xff] %v1261_v33  ;;  %v1262_v36 = vmax.f32 %v1205_v34, 0.0  ;;  %v1209_v37 = vadd.f32 %v1208_v35, %v2115_v49 }
 0x388   : > { %v1210_v38 = vpop.f32.mrf.mxu0 }
 0x389   : > { %1294 = vst [vmem:[%s2123_s26 + $0x78] sm:$0xff] %v1262_v36  ;;  %v1263_v39 = vmax.f32 %v1209_v37, 0.0  ;;  %v1211_v40 = vadd.f32 %v1210_v38, %v2119_v51 }
 0x38a   : > { %v1212_v14 = vpop.f32.mrf.mxu0 }
 0x38b   : > { %1295 = vst [vmem:[%s2123_s26 + $0x80] sm:$0xff] %v1263_v39  ;;  %v1264_v41 = vmax.f32 %v1211_v40, 0.0  ;;  %v1213_v42 = vadd.f32 %v1212_v14, %v2115_v49 }
 0x38c   : > { %v1214_v43 = vpop.f32.mrf.mxu0 }
 0x38d   : > { %1296 = vst [vmem:[%s2123_s26 + $0x88] sm:$0xff] %v1264_v41  ;;  %v1265_v44 = vmax.f32 %v1213_v42, 0.0  ;;  %v1215_v45 = vadd.f32 %v1214_v43, %v2119_v51 }
 0x38e   : > { %v1218_v46 = vpop.f32.mrf.mxu0 }
 0x38f   : > { %1297 = vst [vmem:[%s2123_s26 + $0x90] sm:$0xff] %v1265_v44  ;;  %v1266_v47 = vmax.f32 %v1215_v45, 0.0  ;;  %v1219_v48 = vadd.f32 %v1218_v46, %v2115_v49 }
 0x390   : > { %v1220_v50 = vpop.f32.mrf.mxu0 }
 0x391   : > { %1298 = vst [vmem:[%s2123_s26 + $0x98] sm:$0xff] %v1266_v47  ;;  %v1267_v52 = vmax.f32 %v1219_v48, 0.0  ;;  %v1221_v53 = vadd.f32 %v1220_v50, %v2119_v51 }
 0x392   : > { %v1222_v54 = vpop.f32.mrf.mxu0 }
 0x393   : > { %1299 = vst [vmem:[%s2123_s26 + $0xa0] sm:$0xff] %v1267_v52  ;;  %v1268_v55 = vmax.f32 %v1221_v53, 0.0  ;;  %v1223_v56 = vadd.f32 %v1222_v54, %v2115_v49 }
 0x394   : > { %v1224_v57 = vpop.f32.mrf.mxu0 }
 0x395   : > { %1300 = vst [vmem:[%s2123_s26 + $0xa8] sm:$0xff] %v1268_v55  ;;  %v1269_v58 = vmax.f32 %v1223_v56, 0.0  ;;  %v1225_v59 = vadd.f32 %v1224_v57, %v2119_v51 }
 0x396   : > { %v1228_v60 = vpop.f32.mrf.mxu0 }
 0x397   : > { %1301 = vst [vmem:[%s2123_s26 + $0xb0] sm:$0xff] %v1269_v58  ;;  %v1270_v61 = vmax.f32 %v1225_v59, 0.0  ;;  %v1229_v62 = vadd.f32 %v1228_v60, %v2115_v49 }
 0x398   : > { %v1230_v63 = vpop.f32.mrf.mxu0 }
 0x399   : > { %1302 = vst [vmem:[%s2123_s26 + $0xb8] sm:$0xff] %v1270_v61  ;;  %v1271_v0 = vmax.f32 %v1229_v62, 0.0  ;;  %v1231_v1 = vadd.f32 %v1230_v63, %v2119_v51 }
 0x39a   : > { %v1232_v2 = vpop.f32.mrf.mxu0 }
 0x39b   : > { %1303 = vst [vmem:[%s2123_s26 + $0xc0] sm:$0xff] %v1271_v0  ;;  %v1272_v3 = vmax.f32 %v1231_v1, 0.0  ;;  %v1233_v4 = vadd.f32 %v1232_v2, %v2115_v49 }
 0x39c   : > { %v1234_v5 = vpop.f32.mrf.mxu0 }
 0x39d   : > { %1304 = vst [vmem:[%s2123_s26 + $0xc8] sm:$0xff] %v1272_v3  ;;  %v1273_v6 = vmax.f32 %v1233_v4, 0.0  ;;  %v1235_v7 = vadd.f32 %v1234_v5, %v2119_v51 }
 0x39e   : > { %v1238_v8 = vpop.f32.mrf.mxu0 }
 0x39f   : > { %1305 = vst [vmem:[%s2123_s26 + $0xd0] sm:$0xff] %v1273_v6  ;;  %v1274_v9 = vmax.f32 %v1235_v7, 0.0  ;;  %v1239_v10 = vadd.f32 %v1238_v8, %v2115_v49 }
 0x3a0   : > { %v1240_v11 = vpop.f32.mrf.mxu0 }
 0x3a1   : > { %1306 = vst [vmem:[%s2123_s26 + $0xd8] sm:$0xff] %v1274_v9  ;;  %v1275_v12 = vmax.f32 %v1239_v10, 0.0  ;;  %v1241_v13 = vadd.f32 %v1240_v11, %v2119_v51 }
 0x3a2   : > { %v1242_v15 = vpop.f32.mrf.mxu0 }
 0x3a3   : > { %1307 = vst [vmem:[%s2123_s26 + $0xe0] sm:$0xff] %v1275_v12  ;;  %v1276_v16 = vmax.f32 %v1241_v13, 0.0  ;;  %v1243_v17 = vadd.f32 %v1242_v15, %v2115_v49 }
 0x3a4   : > { %v1244_v18 = vpop.f32.mrf.mxu0 }
 0x3a5   : > { %1308 = vst [vmem:[%s2123_s26 + $0xe8] sm:$0xff] %v1276_v16  ;;  %v1277_v19 = vmax.f32 %v1243_v17, 0.0  ;;  %v1245_v20 = vadd.f32 %v1244_v18, %v2119_v51 }
 0x3a7   : > { %1309 = vst [vmem:[%s2123_s26 + $0xf0] sm:$0xff] %v1277_v19  ;;  %v1278_v21 = vmax.f32 %v1245_v20, 0.0 }
 0x3a9   : > { %1310 = vst [vmem:[%s2123_s26 + $0xf8] sm:$0xff] %v1278_v21 }
 0x3aa   : > { %1743 = shalt.err (!%p1740_p3)
}
 0x3ab   : > { %s1744_s17 = scalar_lea.hbm %s2190_s16, 4096  ;;  %s1748_s27 = scalar_lea.hbm %s2247_s9, 8192 }
 0x3ac   : > { %p1745_p4 = scmp.ne.s32.totalorder %s2190_s16, %s1744_s17  ;;  %p1749_p9 = scmp.lt.s32.totalorder %s2190_s16, %s2247_s9 }
 0x3ad   : > { %p1750_p10 = scmp.lt.s32.totalorder %s1748_s27, %s1744_s17 }
 0x3ae   : > { %p1746_p7 = pnand %p1745_p4, %p1884_p5 }
 0x3af   : > { %p1751_p11 = por %p1750_p10, %p1749_p9 }
 0x3b0   : > { %p1747_p8 = pneg %p1746_p7 }
 0x3b2   : > { %p1752_p12 = pnand %p1751_p11, %p1747_p8 }
 0x3b4   : > { %1755 = shalt.err (!%p1752_p12)
}
 0x3b5   : > { %s1794_s23 = smov 256   ;;  %s1795_s21 = smov 16  }
 0x3b6   : > { %1632 = dma.vmem_to_hbm [thread:$0]  (%p1884_p5), %s2192_s28, 4096, %s2190_s16, %s2198_s13, %s1794_s23, %s1794_s23, %s1795_s21  }
 0x3b7 PF: > { %p1638_p13 = scmp.ge.s32.totalorder %s1790_s12, 2  ;;  %s1341_s22 = sand.u32 1, %s1778_s30  }
 0x3b8   : > { %s1342_s24 = scalar_lea.sflag [#allocation3], %s1341_s22 }
 0x3b9   : > { %p1635_p0 = pnand %p1638_p13, %p1888_p6 }
 0x3bb   : > { %p1636_p1 = pneg %p1635_p0 }
 0x3bd   : > { %1773 = dma.done.wait (%p1636_p1), %s1342_s24, 4096  }
 0x3be   : > { %1775 = vsyncadd (%p1636_p1), %s1342_s24, 4294963200  ;;  %p19_p2 = scmp.ge.s32.totalorder %s1871_s15, 4   ;;  %s2250_s30 = smov %s1782_s10 }
 0x3bf   : > { %s2251_s10 = smov %s1786_s11  ;;  %s2252_s11 = smov %s1882_s18 }
 0x3c0   : > { %s2253_s12 = smov %s1871_s15  ;;  %21 = sbr.rel (!%p19_p2) target bundleno = 3 (0x3), region = 91 }
 0x3c5   :  { %1347 = vsyncpa [#allocation3], 1 }
 0x3c6   :  { %1349 = vsyncpa [#allocation3 + $0x1], 1 }

</bundles_post_ra>
